<compile_context>
chip_gen: v7x
topology: tpu7x:2x2x1
jax: 0.10.0
libtpu: 0.0.40
codegen_flags: <defaults>
</compile_context>

<pallas_src>
import functools
import math

import jax
import jax.numpy as jnp
from jax.experimental import pallas as pl
from jax.experimental.pallas import tpu as pltpu
import numpy as np

LANES = 128
TARGET_BLOCK_ELEMS = 2048 * LANES     # ~1 MiB f32 per input block in VMEM
MAX_RAGGED_LAST_DIM = 32768           # beyond this, fall back to the pad path
NEG_LARGE = -1e4                      # neutral pad logit: exact-0 loss with target 0
VMEM_LIMIT_BYTES = 32 * 1024 * 1024   # explicit (v5e default scoped VMEM is 16 MiB)


@functools.lru_cache(maxsize=None)
def _num_tensorcores() -> int:
    """Best-effort TensorCore count: 2 on v7x, 1 on v5e/v6e (safe fallback 1)."""
    try:
        info = pltpu.get_tpu_info()
        for name in ("num_cores", "core_count", "num_tensorcores",
                     "tensorcore_count", "num_tensor_cores"):
            v = getattr(info, name, None)
            if isinstance(v, int) and 1 <= v <= 16:
                return v
    except Exception:
        pass
    try:
        kind = jax.devices()[0].device_kind.lower()
        if "7x" in kind or "v7" in kind:
            return 2
    except Exception:
        pass
    return 1


def _afl_kernel(x_ref, t_ref, acc_ref, *, steps, block_r, rows, n_blocks,
                full_blocks, needs_mask, gamma_pos, gamma_neg, pos_weight,
                hard_targets):
    c = pl.program_id(0)
    i = pl.program_id(1)
    blk = c * steps + i

    @pl.when(i == 0)
    def _init():
        acc_ref[...] = jnp.zeros_like(acc_ref)

    x = x_ref[...].astype(jnp.float32)
    t = t_ref[...].astype(jnp.float32)

    # softplus(x) and softplus(-x) share a single exp + log1p (2 EUP ops/elem).
    e = jnp.exp(-jnp.abs(x))
    l = jnp.log1p(e)
    sp_pos = jnp.maximum(x, 0.0) + l          # softplus(x)
    sp_neg = jnp.maximum(-x, 0.0) + l         # softplus(-x)

    # binary_cross_entropy_with_logits(reduction='none', pos_weight=pos_weight)
    if pos_weight is None:
        bce = sp_pos - x * t
    else:
        bce = pos_weight * (t * sp_neg) + (1.0 - t) * sp_pos

    if hard_targets:
        # For t in {0,1}: (1-pt)^gamma == exp(-(gp*t*softplus(x)+gn*(1-t)*softplus(-x)))
        # -> 1 extra EUP op, NaN-free (avoids jnp.power rounding issues).
        focal = jnp.exp(-(gamma_pos * t * sp_pos + gamma_neg * (1.0 - t) * sp_neg))
    else:
        # Soft labels: rebuild sigmoid from the exp(-|x|) we already paid for.
        inv = 1.0 / (1.0 + e)
        prob = jnp.where(x >= 0.0, inv, e * inv)          # stable sigmoid(x)
        one_minus_pt = (1.0 - prob) * t + prob * (1.0 - t)
        gamma = gamma_pos * t + gamma_neg * (1.0 - t)
        focal = jnp.power(one_minus_pt, gamma)

    contrib = focal * bce

    def accumulate(v):
        # Sublane fold into the persistent (8, C) accumulator: pure vreg adds.
        if block_r % 8 == 0:
            acc_ref[...] = acc_ref[...] + v.reshape(block_r // 8, 8,
                                                    v.shape[-1]).sum(axis=0)
        else:
            # Tiny single-block case (block_r == full rows, not a multiple of 8).
            acc_ref[0:1, :] = acc_ref[0:1, :] + v.sum(axis=0, keepdims=True)

    if needs_mask:
        # Only the final (partial) real block and clamped out-of-range grid
        # points need row masking; steady-state steps take the cheap path.
        @pl.when(blk < full_blocks)
        def _steady():
            accumulate(contrib)

        @pl.when(blk >= full_blocks)
        def _edge():
            remaining = rows - blk * block_r          # <= 0 for clamped blocks
            rid = jax.lax.broadcasted_iota(jnp.int32, contrib.shape, 0)
            # jnp.where (select) is NaN/Inf-safe against garbage in OOB rows.
            accumulate(jnp.where(rid < remaining, contrib, 0.0))
    else:
        accumulate(contrib)


@functools.partial(jax.jit, static_argnames=("gamma_pos", "gamma_neg",
                                             "pos_weight", "hard_targets",
                                             "_block_rows"))
def asymmetric_focal_loss(logits, targets, *, gamma_pos=0.5, gamma_neg=1.5,
                          pos_weight=None, hard_targets=True, _block_rows=None):
    """Pallas TPU AsymmetricFocalLoss.forward (mean reduction).

    hard_targets=True uses the exact 0/1-target reformulation (fewer EUP ops,
    NaN-free); pass hard_targets=False for soft labels (general path).
    """
    assert logits.shape == targets.shape
    total = int(math.prod(logits.shape))
    if total == 0:
        return jnp.float32(float("nan"))   # torch .mean() of an empty tensor

    if targets.dtype == jnp.bool_:
        targets = targets.astype(jnp.int8)  # avoid i1 VMEM blocks (1B -> 1B, cheap)

    # ---- zero-copy 2-D view (no full-array pad/astype passes) ----------------
    if total % LANES == 0:
        R, C = total // LANES, LANES                       # lane-dense fast path
        x2, t2 = logits.reshape(R, C), targets.reshape(R, C)
    elif logits.ndim >= 2 and int(logits.shape[-1]) <= MAX_RAGGED_LAST_DIM:
        C = int(logits.shape[-1]); R = total // C          # ragged, still zero-copy
        x2, t2 = logits.reshape(R, C), targets.reshape(R, C)
    else:
        # Rare fallback (rank-1 ragged input or huge last dim): one neutral-value
        # lane pad (logit=-1e4, target=0 contributes exactly 0 loss).
        rows = pl.cdiv(total, LANES)
        pad = rows * LANES - total
        xf = jnp.pad(logits.reshape(-1), (0, pad), constant_values=NEG_LARGE)
        tf = jnp.pad(targets.reshape(-1), (0, pad), constant_values=0)
        R, C = rows, LANES
        x2, t2 = xf.reshape(R, C), tf.reshape(R, C)

    # ---- block / grid selection ----------------------------------------------
    lane_c = pl.cdiv(C, LANES) * LANES                     # VMEM lanes per row
    block_r = TARGET_BLOCK_ELEMS // lane_c if _block_rows is None else int(_block_rows)
    if block_r < R:
        block_r = max(8, (block_r // 8) * 8)               # partial blocks: /8 rows
    else:
        block_r = R                                        # single full-extent block
    n_blocks = pl.cdiv(R, block_r)
    full_blocks = R // block_r                             # blocks never needing mask

    cores = _num_tensorcores()
    nc = cores if (cores > 1 and n_blocks >= cores) else 1
    steps = pl.cdiv(n_blocks, nc)
    needs_mask = (nc * steps) > full_blocks

    kernel = functools.partial(
        _afl_kernel, steps=steps, block_r=block_r, rows=R, n_blocks=n_blocks,
        full_blocks=full_blocks, needs_mask=needs_mask,
        gamma_pos=float(gamma_pos), gamma_neg=float(gamma_neg),
        pos_weight=None if pos_weight is None else float(pos_weight),
        hard_targets=bool(hard_targets))

    def in_map(c, i):
        # Clamp out-of-range grid points to the last real block; their
        # contribution is zeroed by the row mask in the kernel.
        return (jnp.minimum(c * steps + i, n_blocks - 1), 0)

    lead_sem = pltpu.CORE_PARALLEL if nc > 1 else pltpu.ARBITRARY
    partials = pl.pallas_call(
        kernel,
        out_shape=jax.ShapeDtypeStruct((nc * 8, C), jnp.float32),
        grid=(nc, steps),
        in_specs=[pl.BlockSpec((block_r, C), in_map),
                  pl.BlockSpec((block_r, C), in_map)],
        out_specs=pl.BlockSpec((8, C), lambda c, i: (c, 0)),
        compiler_params=pltpu.CompilerParams(
            dimension_semantics=(lead_sem, pltpu.ARBITRARY),
            vmem_limit_bytes=VMEM_LIMIT_BYTES),
    )(x2, t2)

    # Final reduce + mean in the wrapper (f32 divisor: exact below 2^24 elements).
    return jnp.sum(partials) / jnp.float32(total)


def _reference(logits, targets, gamma_pos=0.5, gamma_neg=1.5, pos_weight=None):
    x = logits.astype(jnp.float32)
    t = targets.astype(jnp.float32)
    prob = jax.nn.sigmoid(x)
    pt = prob * t + (1.0 - prob) * (1.0 - t)
    gamma = gamma_pos * t + gamma_neg * (1.0 - t)
    l = jnp.log1p(jnp.exp(-jnp.abs(x)))
    sp_pos = jnp.maximum(x, 0.0) + l
    sp_neg = jnp.maximum(-x, 0.0) + l
    if pos_weight is None:
        bce = sp_pos - x * t
    else:
        bce = pos_weight * t * sp_neg + (1.0 - t) * sp_pos
    return jnp.mean(((1.0 - pt) ** gamma) * bce)


if __name__ == "__main__":
    key = jax.random.PRNGKey(0)
    ks = jax.random.split(key, 6)

    # 1) lane-aligned case: f32 logits, int8 targets (targets never f32 in HBM).
    logits = jax.random.normal(ks[0], (2, 4, 16, 16), dtype=jnp.float32) * 2.0
    targets_i8 = (jax.random.uniform(ks[1], (2, 4, 16, 16)) > 0.5).astype(jnp.int8)
    targets_f = targets_i8.astype(jnp.float32)   # reference only

    loss = jax.block_until_ready(asymmetric_focal_loss(logits, targets_i8))
    np.testing.assert_allclose(np.asarray(loss),
                               np.asarray(_reference(logits, targets_f)),
                               rtol=1e-4, atol=1e-6)

    # soft-label-safe general path
    loss_g = jax.block_until_ready(
        asymmetric_focal_loss(logits, targets_i8, hard_targets=False))
    np.testing.assert_allclose(np.asarray(loss_g),
                               np.asarray(_reference(logits, targets_f)),
                               rtol=1e-4, atol=1e-6)

    # pos_weight path
    loss_pw = jax.block_until_ready(
        asymmetric_focal_loss(logits, targets_i8, pos_weight=2.0))
    np.testing.assert_allclose(
        np.asarray(loss_pw),
        np.asarray(_reference(logits, targets_f, pos_weight=2.0)),
        rtol=1e-4, atol=1e-6)

    # 2) ragged last dim, bf16 logits + bool targets: exercises the zero-copy
    #    (R, C) view (no pad pass) and in-kernel dtype casts.
    logits_r = (jax.random.normal(ks[2], (2, 3, 16, 17), dtype=jnp.float32) * 2.0
                ).astype(jnp.bfloat16)
    targets_rb = jax.random.uniform(ks[3], (2, 3, 16, 17)) > 0.5
    loss_r = jax.block_until_ready(asymmetric_focal_loss(logits_r, targets_rb))
    ref_r = _reference(logits_r.astype(jnp.float32),
                       targets_rb.astype(jnp.float32))
    np.testing.assert_allclose(np.asarray(loss_r), np.asarray(ref_r),
                               rtol=1e-4, atol=1e-6)

    # 3) multi-block + partial-final-block mask path (small block override).
    logits_m = jax.random.normal(ks[4], (3, 8, 128), dtype=jnp.float32) * 2.0
    targets_m = (jax.random.uniform(ks[5], (3, 8, 128)) > 0.5).astype(jnp.float32)
    loss_m = jax.block_until_ready(
        asymmetric_focal_loss(logits_m, targets_m, _block_rows=16))
    np.testing.assert_allclose(np.asarray(loss_m),
                               np.asarray(_reference(logits_m, targets_m)),
                               rtol=1e-4, atol=1e-6)

    print("KERNEL_OK")
</pallas_src>

<mosaic_0001>
module attributes {stable_mosaic.version = 11 : i64} {
  func.func @_afl_kernel(%arg0: i32, %arg1: i32, %arg2: memref<16x128xf32, #tpu.memory_space<vmem>>, %arg3: memref<16x128xi8, #tpu.memory_space<vmem>>, %arg4: memref<8x128xf32, #tpu.memory_space<vmem>>) attributes {dimension_semantics = [#tpu.dimension_semantics<arbitrary>, #tpu.dimension_semantics<arbitrary>], iteration_bounds = array<i64: 1, 1>, scalar_prefetch = 0 : i64, scratch_operands = 0 : i64, tpu.core_type = #tpu.core_type<tc>, window_params = [{transform_indices = @transform_0, window_bounds = array<i64: 16, 128>}, {transform_indices = @transform_1, window_bounds = array<i64: 16, 128>}, {transform_indices = @transform_2, window_bounds = array<i64: 8, 128>}]} {
    %c0_i32 = arith.constant 0 : i32
    %0 = arith.cmpi eq, %arg1, %c0_i32 : i32
    %1 = arith.extui %0 : i1 to i32
    %c0_i32_0 = arith.constant 0 : i32
    %2 = arith.cmpi ne, %1, %c0_i32_0 : i32
    scf.if %2 {
      %cst_16 = arith.constant 0.000000e+00 : f32
      %39 = vector.broadcast %cst_16 : f32 to vector<8x128xf32>
      %c0_17 = arith.constant 0 : index
      %c0_18 = arith.constant 0 : index
      %40 = vector.load %arg4[%c0_17, %c0_18] : memref<8x128xf32, #tpu.memory_space<vmem>>, vector<8x128xf32>
      tpu.vector_store %arg4[%c0_17, %c0_18], %39 {strides = array<i32>} : memref<8x128xf32, #tpu.memory_space<vmem>>, vector<8x128xf32>,
    } else {
    }
    %c0 = arith.constant 0 : index
    %c0_1 = arith.constant 0 : index
    %3 = vector.load %arg2[%c0, %c0_1] : memref<16x128xf32, #tpu.memory_space<vmem>>, vector<16x128xf32>
    %c0_2 = arith.constant 0 : index
    %c0_3 = arith.constant 0 : index
    %4 = vector.load %arg3[%c0_2, %c0_3] : memref<16x128xi8, #tpu.memory_space<vmem>>, vector<16x128xi8>
    %5 = arith.sitofp %4 : vector<16x128xi8> to vector<16x128xf32>
    %6 = math.absf %3 : vector<16x128xf32>
    %cst = arith.constant 0.000000e+00 : f32
    %7 = vector.broadcast %cst : f32 to vector<16x128xf32>
    %8 = arith.subf %7, %6 : vector<16x128xf32>
    %9 = math.exp %8 : vector<16x128xf32>
    %10 = math.log1p %9 : vector<16x128xf32>
    %cst_4 = arith.constant 0.000000e+00 : f32
    %11 = vector.broadcast %cst_4 : f32 to vector<16x128xf32>
    %12 = arith.maximumf %3, %11 : vector<16x128xf32>
    %13 = arith.addf %12, %10 : vector<16x128xf32>
    %cst_5 = arith.constant 0.000000e+00 : f32
    %14 = vector.broadcast %cst_5 : f32 to vector<16x128xf32>
    %15 = arith.subf %14, %3 : vector<16x128xf32>
    %cst_6 = arith.constant 0.000000e+00 : f32
    %16 = vector.broadcast %cst_6 : f32 to vector<16x128xf32>
    %17 = arith.maximumf %15, %16 : vector<16x128xf32>
    %18 = arith.addf %17, %10 : vector<16x128xf32>
    %19 = arith.mulf %3, %5 : vector<16x128xf32>
    %20 = arith.subf %13, %19 : vector<16x128xf32>
    %cst_7 = arith.constant 5.000000e-01 : f32
    %21 = vector.broadcast %cst_7 : f32 to vector<16x128xf32>
    %22 = arith.mulf %21, %5 : vector<16x128xf32>
    %23 = arith.mulf %22, %13 : vector<16x128xf32>
    %cst_8 = arith.constant 1.000000e+00 : f32
    %24 = vector.broadcast %cst_8 : f32 to vector<16x128xf32>
    %25 = arith.subf %24, %5 : vector<16x128xf32>
    %cst_9 = arith.constant 1.500000e+00 : f32
    %26 = vector.broadcast %cst_9 : f32 to vector<16x128xf32>
    %27 = arith.mulf %26, %25 : vector<16x128xf32>
    %28 = arith.mulf %27, %18 : vector<16x128xf32>
    %29 = arith.addf %23, %28 : vector<16x128xf32>
    %cst_10 = arith.constant 0.000000e+00 : f32
    %30 = vector.broadcast %cst_10 : f32 to vector<16x128xf32>
    %31 = arith.subf %30, %29 : vector<16x128xf32>
    %32 = math.exp %31 : vector<16x128xf32>
    %33 = arith.mulf %32, %20 : vector<16x128xf32>
    %c0_11 = arith.constant 0 : index
    %c0_12 = arith.constant 0 : index
    %34 = vector.load %arg4[%c0_11, %c0_12] : memref<8x128xf32, #tpu.memory_space<vmem>>, vector<8x128xf32>
    %35 = vector.shape_cast %33 : vector<16x128xf32> to vector<2x8x128xf32>
    %cst_13 = arith.constant dense<0.000000e+00> : vector<8x128xf32>
    %36 = vector.multi_reduction <add>, %35, %cst_13 [0] : vector<2x8x128xf32> to vector<8x128xf32>
    %37 = arith.addf %34, %36 : vector<8x128xf32>
    %c0_14 = arith.constant 0 : index
    %c0_15 = arith.constant 0 : index
    %38 = vector.load %arg4[%c0_14, %c0_15] : memref<8x128xf32, #tpu.memory_space<vmem>>, vector<8x128xf32>
    tpu.vector_store %arg4[%c0_14, %c0_15], %37 {strides = array<i32>} : memref<8x128xf32, #tpu.memory_space<vmem>>, vector<8x128xf32>,
    return
  }
  func.func @transform_0(%arg0: i32, %arg1: i32) -> (i32, i32) {
    %c1_i32 = arith.constant 1 : i32
    %0 = arith.muli %arg0, %c1_i32 : i32
    %1 = arith.addi %0, %arg1 : i32
    %c0_i32 = arith.constant 0 : i32
    %2 = arith.minsi %1, %c0_i32 : i32
    %c0_i32_0 = arith.constant 0 : i32
    %c0_i32_1 = arith.constant 0 : i32
    return %2, %c0_i32_0 : i32, i32
  }
  func.func @transform_1(%arg0: i32, %arg1: i32) -> (i32, i32) {
    %c1_i32 = arith.constant 1 : i32
    %0 = arith.muli %arg0, %c1_i32 : i32
    %1 = arith.addi %0, %arg1 : i32
    %c0_i32 = arith.constant 0 : i32
    %2 = arith.minsi %1, %c0_i32 : i32
    %c0_i32_0 = arith.constant 0 : i32
    %c0_i32_1 = arith.constant 0 : i32
    return %2, %c0_i32_0 : i32, i32
  }
  func.func @transform_2(%arg0: i32, %arg1: i32) -> (i32, i32) {
    %c0_i32 = arith.constant 0 : i32
    %c0_i32_0 = arith.constant 0 : i32
    return %arg0, %c0_i32 : i32, i32
  }
}

</mosaic_0001>

<bundles_post_ra>
// kernel: asymmetric_focal_loss.1
= control target key start
LH: loop header
LB: loop body
LE: loop exit
PB: predicated region body
PF: predicated region fallthrough
CT: control target
= control target key end

     0   :  { %s224_s0 = inlined_call_operand.vmem [shape: f32[16,128], index: 0, kind: input, shape index: {}]   ;;  %s225_s1 = inlined_call_operand.vmem [shape: s8[16,128], index: 1, kind: input, shape index: {}]   ;;  %s226_s2 = inlined_call_operand.vmem [shape: f32[8,128], index: 2, kind: output, shape index: {}]  }
   0x1   :  { %v203_v0 = vld [vmem:[%s224_s0] sm:$0xff]  ;;  %v208_v1 = vld [vmem:[%s224_s0 + $0x8] sm:$0xff] }
   0x2   :  { %v88_v2 = vand.u32 2147483647, %v203_v0  ;;  %v89_v3 = vand.u32 2147483647, %v208_v1  ;;  %v169_v9 = vld [vmem:[%s225_s1] sm:$0xf]  }
   0x3   :  { %v170_v13 = vunpack.c.0.s8 %v169_v9  ;;  %v171_v14 = vunpack.c.1.s8 %v169_v9  ;;  %v118_v22 = vsub.f32 0.0, %v203_v0  ;;  %v119_v24 = vsub.f32 0.0, %v208_v1 }
   0x4   :  { %v90_v4 = vsub.f32 0.0, %v88_v2  ;;  %v91_v5 = vsub.f32 0.0, %v89_v3  ;;  %v114_v30 = vmax.f32 %v203_v0, 0.0  ;;  %v115_v34 = vmax.f32 %v208_v1, 0.0 }
   0x5   :  { %v86_v17 = vcvt.s32.f32 %v170_v13  ;;  %v87_v18 = vcvt.s32.f32 %v171_v14  ;;  %v120_v31 = vmax.f32 %v118_v22, 0.0  ;;  %v121_v35 = vmax.f32 %v119_v24, 0.0 }
   0x6   :  { %v92_v6 = vmul.f32 1.442695, %v90_v4  ;;  %v94_v7 = vmul.f32 1.442695, %v91_v5 }
   0x7   :  { %v132_v25 = vsub.f32 1.0, %v86_v17  ;;  %v133_v27 = vsub.f32 1.0, %v87_v18  ;;  %v128_v37 = vmul.f32 0.5, %v86_v17  ;;  %v129_v40 = vmul.f32 0.5, %v87_v18 }
   0x8   :  { %173 = vpow2.f32 %v92_v6  ;;  %v124_v57 = vmul.f32 %v86_v17, %v203_v0  ;;  %v125_v58 = vmul.f32 %v87_v18, %v208_v1 }
   0x9   :  { %175 = vpow2.f32 %v94_v7  ;;  %v134_v38 = vmul.f32 1.5, %v132_v25  ;;  %v135_v41 = vmul.f32 1.5, %v133_v27 }
  0x12   :  { %v174_v8 = vpop.eup %173 }
  0x13   :  { %v176_v10 = vpop.eup %175  ;;  %v96_v11 = vadd.f32 1.0, %v174_v8  ;;  %v99_v15 = vmul.f32 -0.5, %v174_v8  ;;  %v102_v20 = vand.u32 2147483647, %v174_v8 }
  0x14   :  { %v105_v12 = vadd.f32 1.0, %v176_v10  ;;  %v108_v16 = vmul.f32 -0.5, %v176_v10  ;;  %v111_v23 = vand.u32 2147483647, %v176_v10 }
  0x15   :  { %177 = vlog2.f32 %v96_v11  ;;  %v100_v19 = vadd.f32 1.0, %v99_v15  ;;  %vm103_vm0 = vcmp.lt.f32.partialorder %v102_v20, 0.0004427343 }
  0x16   :  { %179 = vlog2.f32 %v105_v12  ;;  %v109_v21 = vadd.f32 1.0, %v108_v16  ;;  %vm112_vm1 = vcmp.lt.f32.partialorder %v111_v23, 0.0004427343 }
  0x17   :  { %v101_v26 = vmul.f32 %v174_v8, %v100_v19 }
  0x18   :  { %v110_v29 = vmul.f32 %v176_v10, %v109_v21 }
  0x1f   :  { %v178_v28 = vpop.eup %177 }
  0x20   :  { %v180_v32 = vpop.eup %179  ;;  %v98_v33 = vmul.f32 0.6931472, %v178_v28 }
  0x21   :  { %v107_v36 = vmul.f32 0.6931472, %v180_v32 }
  0x22   :  { %v104_v39 = vsel %vm103_vm0, %v101_v26, %v98_v33 }
  0x23   :  { %v113_v42 = vsel %vm112_vm1, %v110_v29, %v107_v36  ;;  %v116_v43 = vadd.f32 %v114_v30, %v104_v39  ;;  %v122_v44 = vadd.f32 %v120_v31, %v104_v39 }
  0x24   :  { %v117_v45 = vadd.f32 %v115_v34, %v113_v42  ;;  %v123_v46 = vadd.f32 %v121_v35, %v113_v42 }
  0x25   :  { %v130_v47 = vmul.f32 %v128_v37, %v116_v43  ;;  %v136_v48 = vmul.f32 %v134_v38, %v122_v44  ;;  %v126_v59 = vsub.f32 %v116_v43, %v124_v57 }
  0x26   :  { %v131_v49 = vmul.f32 %v129_v40, %v117_v45  ;;  %v137_v50 = vmul.f32 %v135_v41, %v123_v46  ;;  %v127_v60 = vsub.f32 %v117_v45, %v125_v58 }
  0x27   :  { %v138_v51 = vadd.f32 %v136_v48, %v130_v47 }
  0x28   :  { %v139_v52 = vadd.f32 %v137_v50, %v131_v49 }
  0x29   :  { %v140_v53 = vsub.f32 0.0, %v138_v51 }
  0x2a   :  { %v141_v54 = vsub.f32 0.0, %v139_v52 }
  0x2b   :  { %v142_v55 = vmul.f32 1.442695, %v140_v53 }
  0x2c   :  { %v144_v56 = vmul.f32 1.442695, %v141_v54 }
  0x2d   :  { %181 = vpow2.f32 %v142_v55 }
  0x2e   :  { %183 = vpow2.f32 %v144_v56 }
  0x37   :  { %v182_v61 = vpop.eup %181 }
  0x38   :  { %v184_v62 = vpop.eup %183  ;;  %v146_v63 = vmul.f32 %v182_v61, %v126_v59 }
  0x39   :  { %v147_v2 = vmul.f32 %v184_v62, %v127_v60 }
  0x3b   :  { %v149_v3 = vadd.f32 %v147_v2, %v146_v63 }
  0x3d   :  { %151 = vst [vmem:[%s226_s2] sm:$0xff] %v149_v3 }

</bundles_post_ra>
